<compile_context>
chip_gen: v7x
topology: tpu7x:2x2x1
jax: 0.10.0
libtpu: 0.0.40
codegen_flags: <defaults>
</compile_context>

<pallas_src>
import functools

import jax
import jax.numpy as jnp
from jax.experimental import pallas as pl
from jax.experimental.pallas import tpu as pltpu


def _round_up(v, m):
    return (v + m - 1) // m * m


def _encoder_kernel(x_ref, w_ref, b_ref, o_ref, scr_ref, slab_ref, *,
                    kernel, stride, padding, alpha):
    # x_ref   : (1, d_in, L_in)            VMEM (bf16), resident across the lt axis
    # w_ref   : (d_out, kernel * d_in_p)   VMEM (bf16), im2col-flattened weight
    # b_ref   : (d_out, 1)                 VMEM (f32)
    # o_ref   : (1, d_out, L_TILE)         VMEM (f32), lane-dense output tile
    # scr_ref : (n_lt, d_in, L_WIN)        VMEM scratch: per-tile zero-padded windows
    # slab_ref: (kernel * d_in_p, L_TILE)  VMEM scratch: im2col slab for this tile
    d_in = x_ref.shape[1]
    l_in = x_ref.shape[2]
    l_tile = o_ref.shape[2]
    n_lt = scr_ref.shape[0]
    l_win = scr_ref.shape[2]
    d_in_p = w_ref.shape[1] // kernel
    ls = l_tile * stride
    lt = pl.program_id(1)

    # ---- Once per batch element: build the per-tile zero-padded input windows
    # in VMEM (static offsets only).  This replaces an HBM-level jnp.pad (a
    # full extra read+write of x) and supplies each tile's (K-1) halo.
    @pl.when(lt == 0)
    def _():
        scr_ref[...] = jnp.zeros_like(scr_ref)
        slab_ref[...] = jnp.zeros_like(slab_ref)   # keep channel-pad rows at zero
        for t in range(n_lt):                      # static unroll (n_lt is small)
            s0 = max(0, t * ls - padding)
            s1 = min(l_in, t * ls - padding + l_win)
            if s1 > s0:
                d0 = s0 - (t * ls - padding)
                scr_ref[t, :, pl.ds(d0, s1 - s0)] = x_ref[0, :, pl.ds(s0, s1 - s0)]

    # ---- im2col: stack the K shifted (strided) views into the slab.
    win_ref = scr_ref.at[lt]                       # (d_in, L_WIN) view, no copy
    for k in range(kernel):
        if stride == 1:
            xk = win_ref[:, pl.ds(k, l_tile)]      # static lane offset
        else:
            # TODO(synk): stride>1 uses a strided value slice; a stride-phase
            # pre-split layout would avoid the gather if this path becomes hot.
            xk = jax.lax.slice(win_ref[...], (0, k),
                               (d_in, k + (l_tile - 1) * stride + 1),
                               (1, stride))
        slab_ref[pl.ds(k * d_in_p, d_in), :] = xk

    # ---- One fat MXU matmul per tile (bf16 inputs, f32 accumulation).
    acc = jnp.dot(w_ref[...], slab_ref[...], preferred_element_type=jnp.float32)
    acc = acc + b_ref[...]                         # bias (f32 broadcast)
    y = jnp.where(acc >= 0, acc, alpha * acc)      # LeakyReLU, f32 epilogue
    o_ref[0] = y.astype(o_ref.dtype)
    # TODO(synk): training-mode dropout would mask `y` here (eval == identity).


def conv1d_leaky_relu(x, weight, bias, *, stride, padding, alpha,
                      compute_dtype=jnp.bfloat16, max_l_tile=512):
    """Conv1d(+bias) followed by LeakyReLU.

    x: (N, d_in, L) f32   weight: (d_out, d_in, K)   bias: (d_out,)
    Returns (N, d_out, L_out) in x.dtype.
    """
    n, d_in, l_in = x.shape
    d_out, _, ksize = weight.shape
    l_out = (l_in + 2 * padding - ksize) // stride + 1

    # Lane-dense length tile: full L_out when it is small, else a multiple of 128.
    if l_out <= max_l_tile:
        l_tile = l_out
    else:
        l_tile = (max_l_tile // 128) * 128
    n_lt = pl.cdiv(l_out, l_tile)

    # Channel padding so every im2col tap starts on an 8-sublane boundary.
    d_in_p = _round_up(d_in, 8)
    kdim = ksize * d_in_p

    # Per-tile padded window length (tile + halo), lane-tile aligned.
    l_win = _round_up((l_tile - 1) * stride + ksize, 128)

    # Wrapper-side glue (channel dim only, cheap): weight -> (d_out, K*d_in_p).
    w_t = jnp.transpose(weight, (0, 2, 1))                         # (d_out, K, d_in)
    if d_in_p != d_in:
        w_t = jnp.pad(w_t, ((0, 0), (0, 0), (0, d_in_p - d_in)))
    w2 = w_t.reshape(d_out, kdim).astype(compute_dtype)
    b2 = bias.reshape(d_out, 1).astype(jnp.float32)
    x_c = x.astype(compute_dtype)

    kern = functools.partial(_encoder_kernel, kernel=ksize, stride=stride,
                             padding=padding, alpha=alpha)

    # Rough VMEM budget (double-buffered blocks + scratch); explicit limit so
    # the tiling also fits v7x's smaller (64 MiB) physical VMEM.
    c_bytes = jnp.dtype(compute_dtype).itemsize
    vmem_est = (2 * d_in * l_in * c_bytes            # x block (double-buffered)
                + 2 * d_out * kdim * c_bytes         # weight
                + 2 * d_out * 4                      # bias
                + 2 * d_out * l_tile * 4             # output block (f32)
                + n_lt * d_in * l_win * c_bytes      # padded-window scratch
                + kdim * l_tile * c_bytes)           # im2col slab scratch
    vmem_limit = int(max(32 * 2 ** 20, min(4 * vmem_est, 64 * 2 ** 20)))

    out = pl.pallas_call(
        kern,
        out_shape=jax.ShapeDtypeStruct((n, d_out, l_out), x.dtype),
        grid_spec=pltpu.PrefetchScalarGridSpec(
            num_scalar_prefetch=0,
            grid=(n, n_lt),
            in_specs=[
                # Whole (un-padded) sequence per batch element; the block index
                # is constant over the length-tile axis, so it is DMA'd from
                # HBM exactly once per batch element.
                pl.BlockSpec((1, d_in, l_in), lambda b, t: (b, 0, 0)),
                pl.BlockSpec((d_out, kdim), lambda b, t: (0, 0)),
                pl.BlockSpec((d_out, 1), lambda b, t: (0, 0)),
            ],
            out_specs=pl.BlockSpec((1, d_out, l_tile), lambda b, t: (b, 0, t)),
            scratch_shapes=[
                pltpu.VMEM((n_lt, d_in, l_win), compute_dtype),   # padded windows
                pltpu.VMEM((kdim, l_tile), compute_dtype),        # im2col slab
            ],
        ),
        compiler_params=pltpu.CompilerParams(
            # Batch axis is embarrassingly parallel (megacore / v7x 2-TC);
            # the length axis carries the per-batch window scratch -> arbitrary.
            dimension_semantics=("parallel", "arbitrary"),
            vmem_limit_bytes=vmem_limit,
        ),
    )(x_c, w2, b2)
    return out


class EncoderLayer:
    """JAX/Pallas port of module/Scodecs.py:EncoderLayer (eval-mode dropout)."""

    def __init__(self, d_in, d_out, kernel, stride, padding,
                 with_shortcut=False, alpha=0.2, dropout=0.1, key=None):
        self.with_shortcut = with_shortcut
        self.stride = stride
        self.padding = padding
        self.alpha = alpha
        key = jax.random.PRNGKey(0) if key is None else key
        kw, kb = jax.random.split(key)
        # PyTorch Conv1d default init: U(-bound, bound), bound = 1/sqrt(d_in * kernel)
        bound = 1.0 / (d_in * kernel) ** 0.5
        self.weight = jax.random.uniform(
            kw, (d_out, d_in, kernel), jnp.float32, -bound, bound)
        self.bias = jax.random.uniform(kb, (d_out,), jnp.float32, -bound, bound)

    def __call__(self, inputs):
        x, shortcut = inputs
        y = conv1d_leaky_relu(
            x, self.weight, self.bias,
            stride=self.stride, padding=self.padding, alpha=self.alpha)
        # dropout: identity in eval mode
        if self.with_shortcut:
            shortcut.append(y)
            return (y, shortcut)
        return (y, shortcut)


def _reference(x, w, b, stride, padding, alpha):
    # Reference on bf16-rounded inputs (the kernel feeds the MXU bf16 with f32 acc).
    xq = x.astype(jnp.bfloat16).astype(jnp.float32)
    wq = w.astype(jnp.bfloat16).astype(jnp.float32)
    r = jax.lax.conv_general_dilated(
        xq, wq, window_strides=(stride,), padding=[(padding, padding)],
        dimension_numbers=("NCH", "OIH", "NCH")) + b[None, :, None]
    return jnp.where(r >= 0, r, alpha * r)


if __name__ == "__main__":
    key = jax.random.PRNGKey(0)
    k_x, k_p, k_x2, k_p2 = jax.random.split(key, 4)

    # 1) Small shapes implied by the forward: (batch, d_in, seq).
    batch, d_in, d_out, seq = 2, 4, 8, 16
    ksize, stride, padding = 3, 1, 1
    x = jax.random.normal(k_x, (batch, d_in, seq), jnp.float32)
    layer = EncoderLayer(d_in, d_out, ksize, stride, padding,
                         with_shortcut=True, alpha=0.2, dropout=0.1, key=k_p)
    y, shortcut = layer((x, []))
    y = jax.block_until_ready(y)

    ref = _reference(x, layer.weight, layer.bias, stride, padding, 0.2)
    l_out = (seq + 2 * padding - ksize) // stride + 1
    assert y.shape == (batch, d_out, l_out)
    assert jnp.allclose(y, ref, atol=1e-4, rtol=1e-4)
    assert len(shortcut) == 1

    # 2) Longer sequence / wider channels to exercise the 128-lane tiling path.
    batch2, d_in2, d_out2, seq2 = 2, 64, 64, 1024
    x2 = jax.random.normal(k_x2, (batch2, d_in2, seq2), jnp.float32)
    layer2 = EncoderLayer(d_in2, d_out2, ksize, stride, padding,
                          with_shortcut=False, alpha=0.2, dropout=0.1, key=k_p2)
    y2, _ = layer2((x2, []))
    y2 = jax.block_until_ready(y2)
    ref2 = _reference(x2, layer2.weight, layer2.bias, stride, padding, 0.2)
    assert y2.shape == (batch2, d_out2, seq2)
    assert jnp.allclose(y2, ref2, atol=1e-3, rtol=1e-3)

    print("KERNEL_OK")
</pallas_src>

<mosaic_0001>
module attributes {stable_mosaic.version = 11 : i64} {
  func.func @_encoder_kernel(%arg0: i32, %arg1: i32, %arg2: memref<1x4x16xbf16, #tpu.memory_space<vmem>>, %arg3: memref<8x24xbf16, #tpu.memory_space<vmem>>, %arg4: memref<8x1xf32, #tpu.memory_space<vmem>>, %arg5: memref<1x8x16xf32, #tpu.memory_space<vmem>>, %arg6: memref<1x4x128xbf16, #tpu.memory_space<vmem>>, %arg7: memref<24x16xbf16, #tpu.memory_space<vmem>>) attributes {dimension_semantics = [#tpu.dimension_semantics<parallel>, #tpu.dimension_semantics<arbitrary>], iteration_bounds = array<i64: 2, 1>, scalar_prefetch = 0 : i64, scratch_operands = 2 : i64, tpu.core_type = #tpu.core_type<tc>, window_params = [{transform_indices = @transform_0, window_bounds = array<i64: 1, 4, 16>}, {pipeline_mode = #tpu.pipeline_mode<synchronous>, transform_indices = @transform_1, window_bounds = array<i64: 8, 24>}, {pipeline_mode = #tpu.pipeline_mode<synchronous>, transform_indices = @transform_2, window_bounds = array<i64: 8, 1>}, {transform_indices = @transform_3, window_bounds = array<i64: 1, 8, 16>}]} {
    %c0_i32 = arith.constant 0 : i32
    %0 = arith.cmpi eq, %arg1, %c0_i32 : i32
    %1 = arith.extui %0 : i1 to i32
    %c0_i32_0 = arith.constant 0 : i32
    %2 = arith.cmpi ne, %1, %c0_i32_0 : i32
    scf.if %2 {
      %cst_25 = arith.constant 0.000000e+00 : bf16
      %29 = vector.broadcast %cst_25 : bf16 to vector<1x4x128xbf16>
      %c0_26 = arith.constant 0 : index
      %c0_27 = arith.constant 0 : index
      %c0_28 = arith.constant 0 : index
      %30 = vector.load %arg6[%c0_26, %c0_27, %c0_28] : memref<1x4x128xbf16, #tpu.memory_space<vmem>>, vector<1x4x128xbf16>
      tpu.vector_store %arg6[%c0_26, %c0_27, %c0_28], %29 {strides = array<i32>} : memref<1x4x128xbf16, #tpu.memory_space<vmem>>, vector<1x4x128xbf16>,
      %cst_29 = arith.constant 0.000000e+00 : bf16
      %31 = vector.broadcast %cst_29 : bf16 to vector<24x16xbf16>
      %c0_30 = arith.constant 0 : index
      %c0_31 = arith.constant 0 : index
      %32 = vector.load %arg7[%c0_30, %c0_31] : memref<24x16xbf16, #tpu.memory_space<vmem>>, vector<24x16xbf16>
      tpu.vector_store %arg7[%c0_30, %c0_31], %31 {strides = array<i32>} : memref<24x16xbf16, #tpu.memory_space<vmem>>, vector<24x16xbf16>,
      %c0_32 = arith.constant 0 : index
      %c0_33 = arith.constant 0 : index
      %c0_34 = arith.constant 0 : index
      %33 = vector.load %arg2[%c0_32, %c0_33, %c0_34] : memref<1x4x16xbf16, #tpu.memory_space<vmem>>, vector<1x4x16xbf16>
      %34 = vector.shape_cast %33 : vector<1x4x16xbf16> to vector<4x16xbf16>
      %c0_35 = arith.constant 0 : index
      %c0_36 = arith.constant 0 : index
      %c1_37 = arith.constant 1 : index
      %35 = vector.load %arg6[%c0_35, %c0_36, %c1_37] : memref<1x4x128xbf16, #tpu.memory_space<vmem>>, vector<1x4x16xbf16>
      %36 = vector.shape_cast %35 : vector<1x4x16xbf16> to vector<4x16xbf16>
      %37 = vector.shape_cast %34 : vector<4x16xbf16> to vector<1x4x16xbf16>
      tpu.vector_store %arg6[%c0_35, %c0_36, %c1_37], %37 {strides = array<i32>} : memref<1x4x128xbf16, #tpu.memory_space<vmem>>, vector<1x4x16xbf16>,
    } else {
    }
    %c0_i32_1 = arith.constant 0 : i32
    %c0_i32_2 = arith.constant 0 : i32
    %3 = tpu.memref_slice %arg6[%arg1, %c0_i32_1, %c0_i32_2] : memref<1x4x128xbf16, #tpu.memory_space<vmem>> -> memref<1x4x128xbf16, #tpu.memory_space<vmem>>
    %4 = tpu.memref_squeeze %3 : memref<1x4x128xbf16, #tpu.memory_space<vmem>> -> memref<4x128xbf16, #tpu.memory_space<vmem>>
    %c0 = arith.constant 0 : index
    %c0_3 = arith.constant 0 : index
    %5 = vector.load %4[%c0, %c0_3] : memref<4x128xbf16, #tpu.memory_space<vmem>>, vector<4x16xbf16>
    %c0_4 = arith.constant 0 : index
    %c0_5 = arith.constant 0 : index
    %6 = vector.load %arg7[%c0_4, %c0_5] : memref<24x16xbf16, #tpu.memory_space<vmem>>, vector<4x16xbf16>
    tpu.vector_store %arg7[%c0_4, %c0_5], %5 {strides = array<i32>} : memref<24x16xbf16, #tpu.memory_space<vmem>>, vector<4x16xbf16>,
    %c0_i32_6 = arith.constant 0 : i32
    %c0_i32_7 = arith.constant 0 : i32
    %7 = tpu.memref_slice %arg6[%arg1, %c0_i32_6, %c0_i32_7] : memref<1x4x128xbf16, #tpu.memory_space<vmem>> -> memref<1x4x128xbf16, #tpu.memory_space<vmem>>
    %8 = tpu.memref_squeeze %7 : memref<1x4x128xbf16, #tpu.memory_space<vmem>> -> memref<4x128xbf16, #tpu.memory_space<vmem>>
    %c0_8 = arith.constant 0 : index
    %c1 = arith.constant 1 : index
    %9 = vector.load %8[%c0_8, %c1] : memref<4x128xbf16, #tpu.memory_space<vmem>>, vector<4x16xbf16>
    %c8 = arith.constant 8 : index
    %c0_9 = arith.constant 0 : index
    %10 = vector.load %arg7[%c8, %c0_9] : memref<24x16xbf16, #tpu.memory_space<vmem>>, vector<4x16xbf16>
    tpu.vector_store %arg7[%c8, %c0_9], %9 {strides = array<i32>} : memref<24x16xbf16, #tpu.memory_space<vmem>>, vector<4x16xbf16>,
    %c0_i32_10 = arith.constant 0 : i32
    %c0_i32_11 = arith.constant 0 : i32
    %11 = tpu.memref_slice %arg6[%arg1, %c0_i32_10, %c0_i32_11] : memref<1x4x128xbf16, #tpu.memory_space<vmem>> -> memref<1x4x128xbf16, #tpu.memory_space<vmem>>
    %12 = tpu.memref_squeeze %11 : memref<1x4x128xbf16, #tpu.memory_space<vmem>> -> memref<4x128xbf16, #tpu.memory_space<vmem>>
    %c0_12 = arith.constant 0 : index
    %c2 = arith.constant 2 : index
    %13 = vector.load %12[%c0_12, %c2] : memref<4x128xbf16, #tpu.memory_space<vmem>>, vector<4x16xbf16>
    %c16 = arith.constant 16 : index
    %c0_13 = arith.constant 0 : index
    %14 = vector.load %arg7[%c16, %c0_13] : memref<24x16xbf16, #tpu.memory_space<vmem>>, vector<4x16xbf16>
    tpu.vector_store %arg7[%c16, %c0_13], %13 {strides = array<i32>} : memref<24x16xbf16, #tpu.memory_space<vmem>>, vector<4x16xbf16>,
    %c0_14 = arith.constant 0 : index
    %c0_15 = arith.constant 0 : index
    %15 = vector.load %arg3[%c0_14, %c0_15] : memref<8x24xbf16, #tpu.memory_space<vmem>>, vector<8x24xbf16>
    %c0_16 = arith.constant 0 : index
    %c0_17 = arith.constant 0 : index
    %16 = vector.load %arg7[%c0_16, %c0_17] : memref<24x16xbf16, #tpu.memory_space<vmem>>, vector<24x16xbf16>
    %cst = arith.constant dense<0.000000e+00> : vector<8x16xf32>
    %17 = tpu.matmul %15, %16, %cst {dimension_numbers = #tpu.dot_dimension_numbers<[1], [0], [0], [1], [0, 0, 1, 1], [], []>} : vector<8x24xbf16>, vector<24x16xbf16>, vector<8x16xf32> -> vector<8x16xf32>
    %c0_18 = arith.constant 0 : index
    %c0_19 = arith.constant 0 : index
    %18 = vector.load %arg4[%c0_18, %c0_19] : memref<8x1xf32, #tpu.memory_space<vmem>>, vector<8x1xf32>
    %19 = vector.broadcast %18 : vector<8x1xf32> to vector<8x16xf32>
    %20 = arith.addf %17, %19 : vector<8x16xf32>
    %cst_20 = arith.constant 0.000000e+00 : f32
    %21 = vector.broadcast %cst_20 : f32 to vector<8x16xf32>
    %22 = arith.cmpf oge, %20, %21 : vector<8x16xf32>
    %cst_21 = arith.constant 2.000000e-01 : f32
    %23 = vector.broadcast %cst_21 : f32 to vector<8x16xf32>
    %24 = arith.mulf %23, %20 : vector<8x16xf32>
    %25 = arith.select %22, %20, %24 : vector<8x16xi1>, vector<8x16xf32>
    %c0_22 = arith.constant 0 : index
    %c0_23 = arith.constant 0 : index
    %c0_24 = arith.constant 0 : index
    %26 = vector.load %arg5[%c0_22, %c0_23, %c0_24] : memref<1x8x16xf32, #tpu.memory_space<vmem>>, vector<1x8x16xf32>
    %27 = vector.shape_cast %26 : vector<1x8x16xf32> to vector<8x16xf32>
    %28 = vector.shape_cast %25 : vector<8x16xf32> to vector<1x8x16xf32>
    tpu.vector_store %arg5[%c0_22, %c0_23, %c0_24], %28 {strides = array<i32>} : memref<1x8x16xf32, #tpu.memory_space<vmem>>, vector<1x8x16xf32>,
    return
  }
  func.func @transform_0(%arg0: i32, %arg1: i32) -> (i32, i32, i32) {
    %c0_i32 = arith.constant 0 : i32
    %c0_i32_0 = arith.constant 0 : i32
    %c0_i32_1 = arith.constant 0 : i32
    return %arg0, %c0_i32, %c0_i32_0 : i32, i32, i32
  }
  func.func @transform_1(%arg0: i32, %arg1: i32) -> (i32, i32) {
    %c0_i32 = arith.constant 0 : i32
    %c0_i32_0 = arith.constant 0 : i32
    %c0_i32_1 = arith.constant 0 : i32
    return %c0_i32, %c0_i32_0 : i32, i32
  }
  func.func @transform_2(%arg0: i32, %arg1: i32) -> (i32, i32) {
    %c0_i32 = arith.constant 0 : i32
    %c0_i32_0 = arith.constant 0 : i32
    %c0_i32_1 = arith.constant 0 : i32
    return %c0_i32, %c0_i32_0 : i32, i32
  }
  func.func @transform_3(%arg0: i32, %arg1: i32) -> (i32, i32, i32) {
    %c0_i32 = arith.constant 0 : i32
    %c0_i32_0 = arith.constant 0 : i32
    return %arg0, %c0_i32, %arg1 : i32, i32, i32
  }
}

</mosaic_0001>

<bundles_post_ra>
// kernel: tpu_custom_call.1
= control target key start
LH: loop header
LB: loop body
LE: loop exit
PB: predicated region body
PF: predicated region fallthrough
CT: control target
= control target key end

     0   :  { %8 = vsyncpa [#allocation5], 0  ;;  %s702_s0 = inlined_call_operand.vmem [shape: bf16[2,4,16], index: 0, kind: input, shape index: {}]   ;;  %s703_s1 = inlined_call_operand.vmem [shape: bf16[8,24], index: 1, kind: input, shape index: {}]   ;;  %s704_s2 = inlined_call_operand.vmem [shape: f32[8,1], index: 2, kind: input, shape index: {}]   ;;  %s705_s3 = inlined_call_operand.hbm [shape: f32[2,8,16], index: 3, kind: output, shape index: {}]  }
   0x1   :  { %10 = vsyncpa [#allocation5 + $0x1], 0  ;;  %s584_s12 = smov 0   ;;  %s586_s13 = smov 0  }
   0x2   :  { %s588_s14 = smov 0   ;;  %s590_s15 = smov 0  }
   0x3   :  { %s592_s16 = smov 0   ;;  %s594_s17 = smov 0  }
   0x4 LB: > { %s385_s18 = sadd.s32 4294967295, %s555_s17   ;;  %s386_s19 = sadd.s32 4294967294, %s555_s17   ;;  %s555_s17 = sphi %s594_s17, %s16_s17   ;;  %s551_s16 = sphi %s592_s16, %s712_s16   ;;  %s547_s15 = sphi %s590_s15, %s711_s15   ;;  %s543_s14 = sphi %s588_s14, %s710_s14   ;;  %s539_s13 = sphi %s586_s13, %s709_s13   ;;  %s535_s12 = sphi %s584_s12, %s708_s12  }
   0x5   : > { %s28_s20 = sadd.s32 1, %s551_s16  ;;  %s105_s21 = sadd.s32 1, %s543_s14 }
   0x6   : > { %p30_p0 = scmp.ge.s32.totalorder %s28_s20, 2  ;;  %p115_p1 = scmp.ne.s32.totalorder %s543_s14, %s539_s13 }
   0x7   : > { %p116_p2 = scmp.eq.s32.totalorder %s385_s18, 1  ;;  %p121_p3 = scmp.ne.s32.totalorder %s539_s13, %s535_s12 }
   0x8   : > { %s714_s20 = smov (%p30_p0, %s28_s20), 0  ;;  %p122_p5 = scmp.eq.s32.totalorder %s386_s19, 1 }
   0x9   : > { %p624_p4 = por %p116_p2, %p115_p1  ;;  %s100_s23 = ssub.s32 %s551_s16, %s714_s20 }
   0xa   : > { %p389_p6 = scmp.ge.s32.totalorder %s555_s17, 1  ;;  %p103_p7 = scmp.eq.s32.totalorder %s100_s23, 0 }
   0xb   : > { %p631_p8 = por %p122_p5, %p121_p3  ;;  %p153_p9 = scmp.lt.s32.totalorder %s555_s17, 3 }
   0xc   : > { %s637_s25 = scalar_select %p103_p7, %s543_s14, %s105_s21  }
   0xd   : > { %p154_p10 = pnand %p389_p6, %p153_p9 }
   0xe   : > { %p176_p11 = scmp.lt.s32.totalorder (!%p154_p10), %s547_s15, 1  ;;  %vm186_vm0 = vcmask (!%p154_p10), 125952   ;;  %v557_v0 = vmov (!%p154_p10), 0   ;;  %s558_s4 = smov (!%p154_p10), 1   ;;  %v559_v2 = vmov (!%p154_p10), 0.0   ;;  %vm195_vm1 = vcmask (!%p154_p10), 132104  }
   0xf   : > { %157 = sbr.rel (%p154_p10) target bundleno = 511 (0x1ff), region = 32  ;;  %185 = vst [vmem:[#allocation2] sm:$0x3] (!%p154_p10), %v557_v0  ;;  %187 = vst.msk [vmem:[#allocation3] sm:$0xf] (!%p154_p10), %vm186_vm0, %v557_v0  ;;  %473 = vset.pattern.permute.xlu1 (!%p154_p10), %v557_v0  ;;  %474 = vset.pattern.permute.xlu0 (!%p154_p10), %v557_v0  ;;  %vm200_vm2 = vcmask (!%p154_p10), 123904  }
  0x10   : > { %189 = vst.msk [vmem:[#allocation3 + $0x8] sm:$0xf] (!%p154_p10), %vm186_vm0, %v557_v0  ;;  %188 = vst.msk [vmem:[#allocation3 + $0x4] sm:$0xf] (!%p154_p10), %vm186_vm0, %v557_v0  ;;  %404 = vmatprep.subr.bf16.mxu0 (!%p154_p10), %v559_v2  ;;  %s560_s5 = smov (!%p154_p10), 126   ;;  %s561_s6 = smov (!%p154_p10), 127  }
  0x11   : > { %vm562_vm3 = vmmov (!%p154_p10), 0   ;;  %v232_v6 = vld [vmem:[%s704_s2] sm:$0xff] (!%p154_p10)  ;;  %vm251_vm4 = vcmask (!%p154_p10), 1043456   ;;  %vm247_vm5 = vcmask (!%p154_p10), 195584   ;;  %s173_s11 = sand.u32 (!%p154_p10), 1, %s539_s13   ;;  %s398_s19 = sshll.u32 (!%p154_p10), %s547_s15, 7 }
  0x12   : > { %408 = vmatprep.mubr.msk.bf16.mxu0 (!%p154_p10), %vm562_vm3, %v559_v2  ;;  %v228_v12 = vld [vmem:[%s703_s1] sm:$0xf] (!%p154_p10)  ;;  %s390_s18 = sshll.u32 (!%p154_p10), %s173_s11, 3  ;;  %vm298_vm7 = vcmask (!%p154_p10), 130048   ;;  %s655_s28 = scalar_lea.hbm (!%p154_p10), %s705_s3, %s398_s19 }
  0x13   : > { %s175_s21 = scalar_lea.vmem (!%p154_p10), [#allocation4], %s390_s18 }
  0x14   : > { %s315_s23 = sshll.u32 (!%p154_p10), %s175_s21, 4  ;;  %s657_s23 = int_to_ptr.vmem [resolvable:$true] %s315_s23 }
  0x15   : > { %s477_s29 = scalar_lea.vmem (!%p154_p10), %s657_s23, 128 }
  0x16   : > { %s177_s26 = scalar_select %p176_p11, %s547_s15, 1 }
  0x17   : > { %s301_s15 = scalar_lea.sflag [#allocation5], %s173_s11  ;;  %p478_p12 = scmp.ne.s32.totalorder %s657_s23, %s477_s29 }
  0x18   : > { %s391_s27 = sshll.u32 %s177_s26, 1 }
  0x19   : > { %s179_s30 = scalar_lea.vmem %s702_s0, %s391_s27  ;;  %p479_p13 = pnand %p478_p12, %p624_p4 }
  0x1a   : > { %v190_v1 = vld [vmem:[%s179_s30] sm:$0x3]  ;;  %s563_s30 = smov [#allocation4]  }
  0x1b   : > { %192 = vrot.lane.b32.xlu0 %v190_v1, %s558_s4  ;;  %p480_p0 = pneg %p479_p13  ;;  %s481_s4 = sshll.u32 %s563_s30, 4  ;;  %s482_s4 = int_to_ptr.vmem [resolvable:$false] %s481_s4 }
  0x1c   : > { %p484_p1 = scmp.lt.s32.totalorder %s657_s23, %s482_s4 }
  0x8d   : > { %v193_v3 = vpop.permute.xlu0 %192 }
  0x8e   : > { %196 = vst.msk [vmem:[#allocation2] sm:$0x3] %vm195_vm1, %v193_v3 }
  0x95   : > { %v393_v4 = vld.sshfl [vmem:[#allocation2] sm:$0x3 pattern:$0x76325410] }
  0x96   : > { %v199_v5 = vld [vmem:[#allocation2] sm:$0x3]  ;;  %224 = vrot.lane.b32.xlu1 %v393_v4, %s560_s5  ;;  %211 = vrot.lane.b32.xlu0 %v393_v4, %s561_s6  ;;  %s483_s5 = scalar_lea.vmem %s482_s4, 256 }
  0x97   : > { %201 = vst.msk [vmem:[#allocation3] sm:$0x3] %vm200_vm2, %v199_v5  ;;  %p485_p2 = scmp.lt.s32.totalorder %s483_s5, %s477_s29 }
  0x99   : > { %p486_p3 = por %p485_p2, %p484_p1 }
  0x9a   : > { %235 = vperm.xlu1 %473, %v232_v6  }
  0x9b   : > { %p487_p5 = pnand %p486_p3, %p480_p0 }
 0x108   : > { %v225_v7 = vpop.permute.xlu1 %224  ;;  %v212_v8 = vpop.permute.xlu0 %211 }
 0x109   : > { %227 = vst.msk [vmem:[#allocation3 + $0x8] sm:$0x3] %vm200_vm2, %v225_v7  ;;  %214 = vst.msk [vmem:[#allocation3 + $0x4] sm:$0x3] %vm200_vm2, %v212_v8 }
 0x110   : > { %v475_v9 = vld [vmem:[#allocation3] sm:$0xff]   ;;  %v476_v10 = vld [vmem:[#allocation3 + $0x8] ss:$0 sps:$4 sm:$0xff]  }
 0x111   : > { %405 = vmatpush3.bf16.msra.mxu0 %v475_v9  ;;  %v253_v11 = vsel %vm251_vm4, %v476_v10, 0 }
 0x112   : > { %406 = vmatprep.subr.bf16.mxu0 %v559_v2 }
 0x115   : > { %407 = vmatpush3.bf16.msra.mxu0 %v253_v11 }
 0x118   : > { %409 = vmatmul.mubr.msk.bf16.vlgmr.msra.gmra.mrb[0].mxu0 %vm247_vm5, %v228_v12 }
 0x119   : > { %v236_v13 = vpop.permute.xlu1 %235 }
 0x1eb   : > { %v289_v14 = vpop.f32.mrb[0].mxu0 }
 0x1ec   : > { %v290_v15 = vadd.f32 %v289_v14, %v236_v13  ;;  %v410_v16 = vpop.f32.mrb[1].mxu0 }
 0x1ed   : > { %v292_v17 = vpop.f32.mrb[2].mxu0 }
 0x1ee   : > { %vm295_vm6 = vcmp.ge.f32.partialorder %v290_v15, 0.0  ;;  %v296_v18 = vmul.f32 0.2, %v290_v15  ;;  %v411_v19 = vpop.f32.mrb[3].mxu0 }
 0x1f0   : > { %v297_v20 = vsel %vm295_vm6, %v290_v15, %v296_v18 }
 0x1f1   : > { %299 = vst.msk [vmem:[%s175_s21] sm:$0xff] %vm298_vm7, %v297_v20 }
 0x1f2   : > { %490 = shalt.err (!%p487_p5)
}
 0x1f3   : > { %s491_s6 = scalar_lea.hbm %s655_s28, 128  ;;  %s495_s9 = scalar_lea.hbm %s705_s3, 256 }
 0x1f4   : > { %p492_p6 = scmp.ne.s32.totalorder %s655_s28, %s491_s6  ;;  %p496_p10 = scmp.lt.u32.totalorder %s655_s28, %s705_s3 }
 0x1f5   : > { %p497_p11 = scmp.lt.u32.totalorder %s495_s9, %s491_s6  ;;  %p499_p13 = scmp.lt.u32.totalorder %s491_s6, %s655_s28 }
 0x1f6   : > { %p493_p7 = pnand %p492_p6, %p624_p4 }
 0x1f7   : > { %p498_p12 = por %p497_p11, %p496_p10 }
 0x1f8   : > { %p494_p9 = pneg %p493_p7 }
 0x1f9   : > { %p500_p0 = por %p499_p13, %p498_p12 }
 0x1fb   : > { %p501_p1 = pnand %p500_p0, %p494_p9 }
 0x1fd   : > { %504 = shalt.err (!%p501_p1)
}
 0x1fe   : > { %412 = dma.vmem_to_hbm [thread:$0]  (%p624_p4), %s657_s23, 128, %s655_s28, %s301_s15  }
 0x1ff PF: > { %p418_p2 = scmp.ge.s32.totalorder %s555_s17, 2  ;;  %s327_s18 = sand.u32 1, %s535_s12  }
 0x200   : > { %s328_s19 = scalar_lea.sflag [#allocation5], %s327_s18 }
 0x201   : > { %p415_p3 = pnand %p418_p2, %p631_p8 }
 0x203   : > { %530 = dma.done.wait (!%p415_p3), %s328_s19, 128  }
 0x204   : > { %532 = vsyncadd (!%p415_p3), %s328_s19, 4294967168  ;;  %s16_s17 = sadd.s32 1, %s555_s17   ;;  %s708_s12 = smov %s539_s13 }
 0x205   : > { %p13_p5 = scmp.ge.s32.totalorder %s16_s17, 4   ;;  %s709_s13 = smov %s543_s14 }
 0x206   : > { %s710_s14 = smov %s637_s25  ;;  %s711_s15 = smov %s551_s16 }
 0x207   : > { %s712_s16 = smov %s714_s20  ;;  %15 = sbr.rel (!%p13_p5) target bundleno = 4 (0x4), region = 72 }
 0x20e   :  { %333 = vsyncpa [#allocation5], 1 }
 0x20f   :  { %335 = vsyncpa [#allocation5 + $0x1], 1 }

</bundles_post_ra>
